<compile_context>
chip_gen: v6e
topology: v6e:2x2x1
jax: 0.10.0
libtpu: 0.0.40
codegen_flags: <defaults>
</compile_context>

<pallas_src>
import functools

import jax
import jax.numpy as jnp
from jax.experimental import pallas as pl
from jax.experimental.pallas import tpu as pltpu


_LANE = 128
_TILE_BUDGET = 6 * 1024 * 1024        # bytes per resident block (x2 dbl-buffer, in+out)
_VMEM_LIMIT = 40 * 1024 * 1024        # safe headroom on v7x (64 MiB) and v5e/v6e (128 MiB)

# dot_general dimension numbers for  A @ B.T  (contract last dim of both).
_DN_TRANS_B = (((1,), (1,)), ((), ()))


def _round_up(a, b):
    return (a + b - 1) // b * b


def _largest_divisor_leq(n, cap):
    cap = max(1, min(n, cap))
    for d in range(cap, 0, -1):
        if n % d == 0:
            return d
    return 1


# ---------------------------------------------------------------------------
# Fused path: pool + gate + scale in one kernel, slab resident in VMEM.
# ---------------------------------------------------------------------------
def _fused_kernel(inv_hw, x_ref, w1_ref, w2_ref, o_ref):
    # x_ref: (g, C, HW); w1_ref: (C//2, C); w2_ref: (C//2->C weights) (C, C//2).
    x = x_ref[...]
    mean = jnp.sum(x.astype(jnp.float32), axis=2) * inv_hw                 # (g, C)
    z1 = jax.lax.dot_general(mean, w1_ref[...].astype(jnp.float32),
                             _DN_TRANS_B,
                             preferred_element_type=jnp.float32)           # (g, C//2)
    z2 = jax.lax.dot_general(z1, w2_ref[...].astype(jnp.float32),
                             _DN_TRANS_B,
                             preferred_element_type=jnp.float32)           # (g, C)
    gate = jax.nn.sigmoid(z2).astype(x.dtype)                              # (g, C)
    o_ref[...] = (x * gate[:, :, None]).astype(o_ref.dtype)


def _cse_fused(U, w1, w2):
    N, C, H, W = U.shape
    HW = H * W
    itemsize = jnp.dtype(U.dtype).itemsize
    slab = C * HW * itemsize

    cap = max(1, _TILE_BUDGET // slab)
    if N >= 2:
        cap = min(cap, N // 2)        # >= 2 parallel blocks for dual-TC chips
    g = _largest_divisor_leq(N, cap)

    x3 = U.reshape(N, C, HW)          # free reshape (layout preserving)

    out = pl.pallas_call(
        functools.partial(_fused_kernel, float(1.0 / HW)),
        out_shape=jax.ShapeDtypeStruct((N, C, HW), U.dtype),
        grid_spec=pltpu.PrefetchScalarGridSpec(
            num_scalar_prefetch=0,
            grid=(N // g,),
            in_specs=[
                pl.BlockSpec((g, C, HW), lambda r: (r, 0, 0)),
                pl.BlockSpec((C // 2, C), lambda r: (0, 0)),
                pl.BlockSpec((C, C // 2), lambda r: (0, 0)),
            ],
            out_specs=pl.BlockSpec((g, C, HW), lambda r: (r, 0, 0)),
        ),
        compiler_params=pltpu.CompilerParams(
            dimension_semantics=("parallel",),
            vmem_limit_bytes=_VMEM_LIMIT),
    )(x3, w1, w2)
    return out.reshape(N, C, H, W)


# ---------------------------------------------------------------------------
# Tiled fallback: pool -> gate -> scale over a (N*C, H*W) slab.
# ---------------------------------------------------------------------------
def _pool_kernel(hw, need_mask, x_ref, sum_ref):
    # x_ref: (TR, TW) input tile; sum_ref: (TR, 1) f32 running row sums.
    t = pl.program_id(1)

    @pl.when(t == 0)
    def _():
        sum_ref[...] = jnp.zeros_like(sum_ref)

    x = x_ref[...].astype(jnp.float32)
    if need_mask:
        # Ragged last lane tile: zero out columns beyond the true HW extent
        # (out-of-bounds reads are undefined, so they must not hit the sum).
        tw = x.shape[1]
        col = t * tw + jax.lax.broadcasted_iota(jnp.int32, x.shape, 1)
        x = jnp.where(col < hw, x, 0.0)
    sum_ref[...] += jnp.sum(x, axis=1, keepdims=True)


def _gate_kernel(inv_hw, sum_ref, w1_ref, w2_ref, gate_ref):
    # sum_ref: (N, C) channel sums; output gate: (N, C) f32.
    mean = sum_ref[...] * inv_hw
    z1 = jax.lax.dot_general(mean, w1_ref[...].astype(jnp.float32),
                             _DN_TRANS_B, preferred_element_type=jnp.float32)
    z2 = jax.lax.dot_general(z1, w2_ref[...].astype(jnp.float32),
                             _DN_TRANS_B, preferred_element_type=jnp.float32)
    gate_ref[...] = jax.nn.sigmoid(z2)


def _scale_kernel(gate_ref, x_ref, o_ref):
    # gate_ref: (TR, 1) in the input dtype; x_ref / o_ref: (TR, TW) tiles.
    # Multiplying in the input dtype keeps bf16 tiles in bf16 vregs.
    o_ref[...] = (x_ref[...] * gate_ref[...]).astype(o_ref.dtype)


def _choose_tiles(nr, hw, itemsize, budget=_TILE_BUDGET):
    """Lane-dense tiles that are guaranteed to fit the VMEM byte budget."""
    # Lane tile: multiple of 128, small enough that at least 8 rows fit.
    tw_cap = max(_LANE, (budget // (8 * itemsize)) // _LANE * _LANE)
    tw = min(_round_up(hw, _LANE), tw_cap)
    # Row tile: multiple of 8, as many rows as fit the budget.  Ragged grids
    # are fine: the pool kernel masks OOB columns and Pallas drops OOB writes.
    tr_cap = max(8, (budget // (tw * itemsize)) // 8 * 8)
    tr = min(_round_up(nr, 8), tr_cap)
    # Keep at least 2 row blocks when possible so the 'parallel' axis can be
    # sharded across TensorCores.
    if nr >= 16:
        tr = min(tr, max(8, (nr - 1) // 8 * 8))
    return tr, tw


def _cse_tiled(U, w1, w2):
    N, C, H, W = U.shape
    HW = H * W
    NR = N * C
    itemsize = jnp.dtype(U.dtype).itemsize

    x2 = U.reshape(NR, HW)            # free reshape, no padding
    tr, tw = _choose_tiles(NR, HW, itemsize)
    r_tiles = pl.cdiv(NR, tr)
    t_tiles = pl.cdiv(HW, tw)
    need_mask = (HW % tw) != 0

    # ---- Pass 1: tiled global average pool (f32 row-sum accumulator) ----
    sums = pl.pallas_call(
        functools.partial(_pool_kernel, HW, need_mask),
        out_shape=jax.ShapeDtypeStruct((NR, 1), jnp.float32),
        grid_spec=pltpu.PrefetchScalarGridSpec(
            num_scalar_prefetch=0,
            grid=(r_tiles, t_tiles),
            in_specs=[pl.BlockSpec((tr, tw), lambda r, t: (r, t))],
            out_specs=pl.BlockSpec((tr, 1), lambda r, t: (r, 0)),
        ),
        compiler_params=pltpu.CompilerParams(
            dimension_semantics=("parallel", "arbitrary"),
            vmem_limit_bytes=_VMEM_LIMIT),
    )(x2)

    # ---- Pass 2: tiny batched gate (single invocation; cost is negligible
    # relative to streaming the huge feature map on this path). ----
    gate = pl.pallas_call(
        functools.partial(_gate_kernel, float(1.0 / HW)),
        out_shape=jax.ShapeDtypeStruct((N, C), jnp.float32),
    )(sums.reshape(N, C), w1, w2)

    # ---- Pass 3: tiled, lane-dense elementwise scale (no output slicing;
    # boundary-tile OOB stores are dropped by Pallas). ----
    out2 = pl.pallas_call(
        _scale_kernel,
        out_shape=jax.ShapeDtypeStruct((NR, HW), U.dtype),
        grid_spec=pltpu.PrefetchScalarGridSpec(
            num_scalar_prefetch=0,
            grid=(r_tiles, t_tiles),
            in_specs=[
                pl.BlockSpec((tr, 1), lambda r, t: (r, 0)),
                pl.BlockSpec((tr, tw), lambda r, t: (r, t)),
            ],
            out_specs=pl.BlockSpec((tr, tw), lambda r, t: (r, t)),
        ),
        compiler_params=pltpu.CompilerParams(
            dimension_semantics=("parallel", "parallel"),
            vmem_limit_bytes=_VMEM_LIMIT),
    )(gate.astype(U.dtype).reshape(NR, 1), x2)

    return out2.reshape(N, C, H, W)


# ---------------------------------------------------------------------------
# Public entry point.
# ---------------------------------------------------------------------------
def cse_forward(U, w1, w2):
    """cSE forward. U: (N, C, H, W); w1: (C//2, C); w2: (C, C//2)."""
    N, C, H, W = U.shape
    HW = H * W
    itemsize = jnp.dtype(U.dtype).itemsize
    slab_bytes = C * HW * itemsize
    if slab_bytes <= _TILE_BUDGET:
        return _cse_fused(U, w1, w2)
    return _cse_tiled(U, w1, w2)


def reference(U, w1, w2):
    z = jnp.mean(U, axis=(2, 3))                      # (N, C)
    z1 = z @ w1.T                                     # (N, C//2)
    z2 = z1 @ w2.T                                    # (N, C)
    s = jax.nn.sigmoid(z2)[:, :, None, None]          # (N, C, 1, 1)
    return U * s


if __name__ == "__main__":
    key = jax.random.PRNGKey(0)
    k_u, k_w1, k_w2, k_u2 = jax.random.split(key, 4)

    # --- main test: fused single-kernel path -------------------------------
    N, C, H, W = 2, 4, 16, 16
    U = jax.random.normal(k_u, (N, C, H, W), dtype=jnp.float32)
    # Conv_Squeeze weight: (out=C//2, in=C, 1, 1) -> squeeze to (C//2, C)
    w1 = jax.random.normal(k_w1, (C // 2, C), dtype=jnp.float32) * 0.5
    # Conv_Excitation weight: (out=C, in=C//2, 1, 1) -> squeeze to (C, C//2)
    w2 = jax.random.normal(k_w2, (C, C // 2), dtype=jnp.float32) * 0.5

    out = cse_forward(U, w1, w2)
    jax.block_until_ready(out)
    ref = reference(U, w1, w2)
    assert out.shape == (N, C, H, W)
    assert jnp.allclose(out, ref, atol=1e-5, rtol=1e-5)

    # --- secondary test: tiled fallback path with ragged (non-128) HW ------
    H2, W2 = 15, 17
    U2 = jax.random.normal(k_u2, (N, C, H2, W2), dtype=jnp.float32)
    out2 = _cse_tiled(U2, w1, w2)
    jax.block_until_ready(out2)
    ref2 = reference(U2, w1, w2)
    assert out2.shape == (N, C, H2, W2)
    assert jnp.allclose(out2, ref2, atol=1e-5, rtol=1e-5)

    print("KERNEL_OK")
</pallas_src>

<mosaic_0001>
module attributes {stable_mosaic.version = 11 : i64} {
  func.func @_fused_kernel(%arg0: i32, %arg1: memref<1x4x256xf32, #tpu.memory_space<vmem>>, %arg2: memref<2x4xf32, #tpu.memory_space<vmem>>, %arg3: memref<4x2xf32, #tpu.memory_space<vmem>>, %arg4: memref<1x4x256xf32, #tpu.memory_space<vmem>>) attributes {dimension_semantics = [#tpu.dimension_semantics<parallel>], iteration_bounds = array<i64: 2>, scalar_prefetch = 0 : i64, scratch_operands = 0 : i64, tpu.core_type = #tpu.core_type<tc>, window_params = [{transform_indices = @transform_0, window_bounds = array<i64: 1, 4, 256>}, {pipeline_mode = #tpu.pipeline_mode<synchronous>, transform_indices = @transform_1, window_bounds = array<i64: 2, 4>}, {pipeline_mode = #tpu.pipeline_mode<synchronous>, transform_indices = @transform_2, window_bounds = array<i64: 4, 2>}, {transform_indices = @transform_3, window_bounds = array<i64: 1, 4, 256>}]} {
    %c0 = arith.constant 0 : index
    %c0_0 = arith.constant 0 : index
    %c0_1 = arith.constant 0 : index
    %0 = vector.load %arg1[%c0, %c0_0, %c0_1] : memref<1x4x256xf32, #tpu.memory_space<vmem>>, vector<1x4x256xf32>
    %cst = arith.constant dense<0.000000e+00> : vector<1x4xf32>
    %1 = vector.multi_reduction <add>, %0, %cst [2] : vector<1x4x256xf32> to vector<1x4xf32>
    %cst_2 = arith.constant 3.906250e-03 : f32
    %2 = vector.broadcast %cst_2 : f32 to vector<1x4xf32>
    %3 = arith.mulf %1, %2 : vector<1x4xf32>
    %c0_3 = arith.constant 0 : index
    %c0_4 = arith.constant 0 : index
    %4 = vector.load %arg2[%c0_3, %c0_4] : memref<2x4xf32, #tpu.memory_space<vmem>>, vector<2x4xf32>
    %cst_5 = arith.constant dense<0.000000e+00> : vector<1x2xf32>
    %5 = tpu.matmul %3, %4, %cst_5 {dimension_numbers = #tpu.dot_dimension_numbers<[1], [1], [0], [0], [0, 0, 1, 0], [], []>} : vector<1x4xf32>, vector<2x4xf32>, vector<1x2xf32> -> vector<1x2xf32>
    %c0_6 = arith.constant 0 : index
    %c0_7 = arith.constant 0 : index
    %6 = vector.load %arg3[%c0_6, %c0_7] : memref<4x2xf32, #tpu.memory_space<vmem>>, vector<4x2xf32>
    %cst_8 = arith.constant dense<0.000000e+00> : vector<1x4xf32>
    %7 = tpu.matmul %5, %6, %cst_8 {dimension_numbers = #tpu.dot_dimension_numbers<[1], [1], [0], [0], [0, 0, 1, 0], [], []>} : vector<1x2xf32>, vector<4x2xf32>, vector<1x4xf32> -> vector<1x4xf32>
    %8 = arith.negf %7 : vector<1x4xf32>
    %9 = math.exp %8 : vector<1x4xf32>
    %cst_9 = arith.constant 1.000000e+00 : f32
    %10 = vector.broadcast %cst_9 : f32 to vector<1x4xf32>
    %11 = arith.addf %10, %9 : vector<1x4xf32>
    %12 = arith.divf %10, %11 : vector<1x4xf32>
    %13 = vector.shape_cast %12 : vector<1x4xf32> to vector<1x4x1xf32>
    %14 = vector.broadcast %13 : vector<1x4x1xf32> to vector<1x4x256xf32>
    %15 = arith.mulf %0, %14 : vector<1x4x256xf32>
    %c0_10 = arith.constant 0 : index
    %c0_11 = arith.constant 0 : index
    %c0_12 = arith.constant 0 : index
    %16 = vector.load %arg4[%c0_10, %c0_11, %c0_12] : memref<1x4x256xf32, #tpu.memory_space<vmem>>, vector<1x4x256xf32>
    tpu.vector_store %arg4[%c0_10, %c0_11, %c0_12], %15 {strides = array<i32>} : memref<1x4x256xf32, #tpu.memory_space<vmem>>, vector<1x4x256xf32>,
    return
  }
  func.func @transform_0(%arg0: i32) -> (i32, i32, i32) {
    %c0_i32 = arith.constant 0 : i32
    %c0_i32_0 = arith.constant 0 : i32
    %c0_i32_1 = arith.constant 0 : i32
    return %arg0, %c0_i32, %c0_i32_0 : i32, i32, i32
  }
  func.func @transform_1(%arg0: i32) -> (i32, i32) {
    %c0_i32 = arith.constant 0 : i32
    %c0_i32_0 = arith.constant 0 : i32
    %c0_i32_1 = arith.constant 0 : i32
    return %c0_i32, %c0_i32_0 : i32, i32
  }
  func.func @transform_2(%arg0: i32) -> (i32, i32) {
    %c0_i32 = arith.constant 0 : i32
    %c0_i32_0 = arith.constant 0 : i32
    %c0_i32_1 = arith.constant 0 : i32
    return %c0_i32, %c0_i32_0 : i32, i32
  }
  func.func @transform_3(%arg0: i32) -> (i32, i32, i32) {
    %c0_i32 = arith.constant 0 : i32
    %c0_i32_0 = arith.constant 0 : i32
    %c0_i32_1 = arith.constant 0 : i32
    return %arg0, %c0_i32, %c0_i32_0 : i32, i32, i32
  }
}

</mosaic_0001>

<bundles_post_ra>
// kernel: tpu_custom_call.1
= control target key start
LH: loop header
LB: loop body
LE: loop exit
PB: predicated region body
PF: predicated region fallthrough
CT: control target
= control target key end

     0   :  { %8 = vsyncpa [#allocation3], 0  ;;  %s830_s0 = inlined_call_operand.hbm [shape: f32[2,4,256], index: 0, kind: input, shape index: {}]   ;;  %s831_s1 = inlined_call_operand.vmem [shape: f32[2,4], index: 1, kind: input, shape index: {}]   ;;  %s832_s2 = inlined_call_operand.vmem [shape: f32[4,2], index: 2, kind: input, shape index: {}]   ;;  %s833_s3 = inlined_call_operand.hbm [shape: f32[2,4,256], index: 3, kind: output, shape index: {}]  }
   0x1   :  { %10 = vsyncpa [#allocation3 + $0x1], 0 }
   0x2   :  { %11 = vsyncpa [#allocation4], 0 }
   0x3   :  { %13 = vsyncpa [#allocation4 + $0x1], 0  ;;  %s677_s12 = smov 0   ;;  %s679_s13 = smov 0  }
   0x4   :  { %s681_s14 = smov 0   ;;  %s683_s15 = smov 0  }
   0x5 LB: > { %s698_s16 = sadd.s32 4294967295, %s650_s15   ;;  %s469_s17 = sadd.s32 4294967294, %s650_s15   ;;  %s650_s15 = sphi %s683_s15, %s850_s15   ;;  %s646_s14 = sphi %s681_s14, %s849_s14   ;;  %s642_s13 = sphi %s679_s13, %s848_s13   ;;  %s638_s12 = sphi %s677_s12, %s847_s12  }
   0x6   : > { %s702_s18 = sadd.s32 1, %s650_s15   ;;  %s26_s19 = sadd.s32 1, %s646_s14 }
   0x7   : > { %s23_s20 = ssub.s32 %s650_s15, %s702_s18  ;;  %p33_p0 = scmp.ne.s32.totalorder %s646_s14, %s642_s13 }
   0x8   : > { %p24_p1 = scmp.eq.s32.totalorder %s23_s20, 0  ;;  %p34_p2 = scmp.eq.s32.totalorder %s650_s15, 0 }
   0x9   : > { %p39_p3 = scmp.ne.s32.totalorder %s642_s13, %s638_s12  ;;  %p40_p4 = scmp.eq.s32.totalorder %s698_s16, 0 }
   0xa   : > { %s714_s21 = scalar_select %p24_p1, %s646_s14, %s26_s19  }
   0xb   : > { %p716_p5 = por %p34_p2, %p33_p0  ;;  %p720_p6 = por %p40_p4, %p39_p3 }
   0xc   : > { %p105_p7 = scmp.eq.s32.totalorder %s698_s16, 1  ;;  %p111_p8 = scmp.eq.s32.totalorder %s469_s17, 1 }
   0xd   : > { %s837_s23 = scalar_select %p720_p6, 1, 0 }
   0xe   : > { %p516_p10 = scmp.lt.s32.totalorder %s650_s15, 2  ;;  %p727_p11 = por %p105_p7, %p33_p0 }
   0xf   : > { %p731_p12 = por %p111_p8, %p39_p3  ;;  %s137_s26 = sand.u32 1, %s646_s14  }
  0x10   : > { %s838_s24 = scalar_select %p727_p11, 1, 0 }
  0x11   : > { %s839_s25 = scalar_select %p731_p12, 1, 0 }
  0x12   : > { %s488_s27 = sshll.u32 %s650_s15, 7  ;;  %s472_s28 = sshll.u32 %s137_s26, 3 }
  0x13   : > { %s740_s4 = scalar_lea.hbm %s830_s0, %s488_s27  ;;  %s141_s5 = scalar_lea.vmem [#allocation2], %s472_s28 }
  0x14   : > { %s149_s6 = sshll.u32 %s141_s5, 4  ;;  %p744_p13 = pnand %p516_p10, %p716_p5  ;;  %s748_s6 = int_to_ptr.vmem [resolvable:$true] %s149_s6 }
  0x15   : > { %s138_s8 = scalar_lea.sflag [#allocation3], %s137_s26  ;;  %s558_s9 = scalar_lea.hbm %s740_s4, 128 }
  0x16   : > { %p559_p2 = scmp.ne.s32.totalorder %s740_s4, %s558_s9  ;;  %p560_p3 = pneg %p744_p13 }
  0x17   : > { %s563_s17 = scalar_lea.hbm %s830_s0, 256  ;;  %p564_p5 = scmp.lt.s32.totalorder %s740_s4, %s830_s0 }
  0x18   : > { %p561_p4 = pnand %p560_p3, %p559_p2  ;;  %p565_p8 = scmp.lt.s32.totalorder %s563_s17, %s558_s9 }
  0x1a   : > { %p562_p7 = pneg %p561_p4  ;;  %p566_p10 = por %p565_p8, %p564_p5 }
  0x1c   : > { %p567_p9 = pnand %p566_p10, %p562_p7 }
  0x1e   : > { %570 = shalt.err (!%p567_p9)
}
  0x1f   : > { %s571_s22 = scalar_lea.vmem %s748_s6, 128  ;;  %s652_s26 = smov [#allocation2]  }
  0x20   : > { %p572_p0 = scmp.ne.s32.totalorder %s748_s6, %s571_s22  ;;  %s576_s27 = sshll.u32 %s652_s26, 4  ;;  %s577_s27 = int_to_ptr.vmem [resolvable:$false] %s576_s27 }
  0x21   : > { %s578_s28 = scalar_lea.vmem %s577_s27, 256  ;;  %p579_p4 = scmp.lt.s32.totalorder %s748_s6, %s577_s27 }
  0x22   : > { %p574_p1 = pnand %p572_p0, %p560_p3  ;;  %p580_p12 = scmp.lt.s32.totalorder %s578_s28, %s571_s22 }
  0x24   : > { %p575_p2 = pneg %p574_p1  ;;  %p581_p11 = por %p580_p12, %p579_p4 }
  0x26   : > { %p582_p6 = pnand %p581_p11, %p575_p2 }
  0x28   : > { %585 = shalt.err (!%p582_p6)
}
  0x29   : > { %511 = dma.hbm_to_vmem [thread:$0]  (!%p744_p13), %s740_s4, 128, %s748_s6, %s138_s8  }
  0x2a   : > { %p841_p9 = scmp.lt.s32.totalorder %s650_s15, 3  ;;  %p842_p7 = scmp.ge.s32.totalorder %s650_s15, 1 }
  0x2c   : > { %p155_p0 = pnand %p842_p7, %p841_p9 }
  0x2d   : > { %s775_s29 = sand.u32 (!%p155_p0), 1, %s642_s13   ;;  %p843_p6 = scmp.ne.s32.totalorder (!%p155_p0), %s837_s23, 0 }
  0x2e   : > { %158 = sbr.rel (%p155_p0) target bundleno = 752 (0x2f0), region = 32  ;;  %s476_s30 = sshll.u32 (!%p155_p0), %s775_s29, 3 }
  0x2f   : > { %s161_s5 = scalar_lea.sflag (!%p155_p0), [#allocation3], %s775_s29  ;;  %s164_s7 = scalar_lea.vmem (!%p155_p0), [#allocation2], %s476_s30 }
  0x33   : > { %629 = dma.done.wait (%p843_p6), %s161_s5, 128  }
  0x34   : > { %631 = vsyncadd (%p843_p6), %s161_s5, 4294967168  ;;  %vm191_vm0 = vcmask 1043456   ;;  %v187_v0 = vld [vmem:[%s164_s7] sm:$0xff]  ;;  %v653_v5 = vmov 0.0   ;;  %vm206_vm1 = vcmask 31744   ;;  %vm654_vm2 = vmmov 0  }
  0x35   : > { %v189_v1 = vcombine.high %v187_v0, %v187_v0  ;;  %v192_v2 = vsel %vm191_vm0, %v187_v0, 0.0  ;;  %494 = vmatprep.subr.mxu0 %v653_v5  ;;  %v198_v6 = vld [vmem:[%s831_s1] sm:$0x3]  ;;  %499 = vmatprep.subr.mxu1 %v653_v5  ;;  %vm283_vm3 = vcmask 15360   ;;  %v200_v8 = vlaneseq  ;;  %s489_s9 = sshll.u32 %s698_s16, 7  ;;  %s186_s10 = scalar_lea.vmem [#allocation5], %s476_s30 }
  0x36   : > { %495 = vmatpush3.xpose.msk.msra.mxu0 %vm206_vm1, %v198_v6  ;;  %496 = vmatprep.mubr.msk.f32.mxu0 %vm654_vm2, %v653_v5  ;;  %v282_v7 = vld [vmem:[%s832_s2] sm:$0xf]  ;;  %v655_v25 = vmov 839922192   ;;  %s399_s11 = sshll.u32 %s186_s10, 4  ;;  %s397_s20 = scalar_lea.hbm %s833_s3, %s489_s9  ;;  %s400_s11 = int_to_ptr.vmem [resolvable:$true] %s399_s11 }
  0x37   : > { %v193_v3 = vsel %vm191_vm0, %v189_v1, 0.0  ;;  %501 = vmatprep.mubr.msk.f32.mxu1 %vm654_vm2, %v653_v5  ;;  %500 = vmatpush3.xpose.msk.msra.mxu1 %vm283_vm3, %v282_v7  ;;  %v201_v9 = vand.u32 127, %v200_v8  ;;  %v203_v10 = vshrl.u32 %v200_v8, 7  ;;  %v375_v26 = vunpack.c.l.s4 %v655_v25  ;;  %s385_s22 = scalar_lea.sflag [#allocation4], %s775_s29  ;;  %s586_s26 = scalar_lea.vmem %s400_s11, 128 }
  0x38   : > { %v194_v4 = vadd.f32 %v193_v3, %v192_v2  ;;  %p587_p11 = scmp.ne.s32.totalorder %s400_s11, %s586_s26  ;;  %p844_p12 = scmp.ne.s32.totalorder %s838_s24, 0 }
  0x39   : > { %v204_v11 = vsub.s32 %v201_v9, %v203_v10  ;;  %v368_v22 = vsub.s32 0, %v203_v10  ;;  %v376_v27 = vunpack.c.0.s8 %v375_v26  ;;  %s656_s27 = smov [#allocation5]  }
  0x3a   : > { %195 = vadd.xlane.f32.xlu0 %v194_v4  ;;  %p588_p13 = pnand %p587_p11, %p844_p12  ;;  %s590_s28 = sshll.u32 %s656_s27, 4  ;;  %s591_s28 = int_to_ptr.vmem [resolvable:$false] %s590_s28 }
  0x3b   : > { %v379_v28 = vsub.s32 %v376_v27, %v203_v10  ;;  %s592_s16 = scalar_lea.vmem %s591_s28, 256  ;;  %p593_p3 = scmp.lt.s32.totalorder %s400_s11, %s591_s28 }
  0x3c   : > { %p589_p1 = pneg %p588_p13  ;;  %p594_p5 = scmp.lt.s32.totalorder %s592_s16, %s586_s26 }
  0x3e   : > { %p595_p8 = por %p594_p5, %p593_p3 }
  0x40   : > { %p596_p10 = pnand %p595_p8, %p589_p1 }
  0xc3   : > { %v196_v12 = vpop.xlane.xlu0 %195 }
  0xc4   : > { %v197_v13 = vmul.f32 0.00390625, %v196_v12 }
  0xc6   : > { %v205_v14 = vrot.slane %v197_v13, %v204_v11 }
  0xc8   : > { %497 = vmatmul.mubr.msk.f32.vlgmr.msra.gmra.mxu0 %vm206_vm1, %v205_v14 }
 0x188   : > { %v278_v15 = vpop.f32.mrf.mxu0 }
 0x189   : > { %502 = vmatmul.mubr.msk.f32.vlgmr.msra.gmra.mxu1 %vm283_vm3, %v278_v15 }
 0x18a   : > { %v498_v16 = vpop.f32.mrf.mxu0 }
 0x249   : > { %v356_v17 = vpop.f32.mrf.mxu1 }
 0x24a   : > { %v482_v18 = vmul.f32 -1.442695, %v356_v17 }
 0x24b   : > { %v503_v19 = vpop.f32.mrf.mxu1 }
 0x24c   : > { %554 = vpow2.f32 %v482_v18 }
 0x259   : > { %v555_v20 = vpop.eup %554 }
 0x25a   : > { %v363_v21 = vadd.f32 1.0, %v555_v20 }
 0x25c   : > { %556 = vrcp.f32 %v363_v21 }
 0x269   : > { %v557_v23 = vpop.eup %556 }
 0x26a   : > { %v369_v24 = vrot.slane %v557_v23, %v368_v22 }
 0x26c   : > { %371 = vbcast.lane.b32.xlu0 %v369_v24, 256 }
 0x2de   : > { %v372_v29 = vpop.permute.xlu0 %371 }
 0x2df   : > { %v380_v30 = vrot.slane %v372_v29, %v379_v28 }
 0x2e1   : > { %v382_v31 = vmul.f32 %v380_v30, %v187_v0 }
 0x2e3   : > { %383 = vst [vmem:[%s186_s10] sm:$0xff] %v382_v31 }
 0x2e4   : > { %599 = shalt.err (!%p596_p10)
}
 0x2e5   : > { %s600_s30 = scalar_lea.hbm %s397_s20, 128  ;;  %s604_s7 = scalar_lea.hbm %s833_s3, 256 }
 0x2e6   : > { %p601_p2 = scmp.ne.s32.totalorder %s397_s20, %s600_s30  ;;  %p605_p7 = scmp.lt.s32.totalorder %s397_s20, %s833_s3 }
 0x2e7   : > { %p606_p0 = scmp.lt.s32.totalorder %s604_s7, %s600_s30 }
 0x2e8   : > { %p602_p4 = pnand %p601_p2, %p844_p12 }
 0x2e9   : > { %p607_p6 = por %p606_p0, %p605_p7 }
 0x2ea   : > { %p603_p9 = pneg %p602_p4 }
 0x2ec   : > { %p608_p11 = pnand %p607_p6, %p603_p9 }
 0x2ee   : > { %611 = shalt.err (!%p608_p11)
}
 0x2ef   : > { %506 = dma.vmem_to_hbm [thread:$0]  (%p844_p12), %s400_s11, 128, %s397_s20, %s385_s22  }
 0x2f0 PF: > { %s411_s23 = sand.u32 1, %s638_s12   ;;  %p845_p13 = scmp.ne.s32.totalorder %s839_s25, 0 }
 0x2f1   : > { %p846_p1 = scmp.ge.s32.totalorder %s650_s15, 2  ;;  %s412_s8 = scalar_lea.sflag [#allocation4], %s411_s23 }
 0x2f3   : > { %p513_p3 = pnand %p846_p1, %p845_p13 }
 0x2f5   : > { %p514_p5 = pneg %p513_p3 }
 0x2f7   : > { %633 = dma.done.wait (%p514_p5), %s412_s8, 128  }
 0x2f8   : > { %635 = vsyncadd (%p514_p5), %s412_s8, 4294967168  ;;  %p16_p8 = scmp.ge.s32.totalorder %s702_s18, 4   ;;  %s847_s12 = smov %s642_s13 }
 0x2f9   : > { %s848_s13 = smov %s646_s14  ;;  %s849_s14 = smov %s714_s21 }
 0x2fa   : > { %s850_s15 = smov %s702_s18  ;;  %18 = sbr.rel (!%p16_p8) target bundleno = 5 (0x5), region = 77 }
 0x2ff   :  { %417 = vsyncpa [#allocation3], 1 }
 0x300   :  { %419 = vsyncpa [#allocation3 + $0x1], 1 }
 0x301   :  { %420 = vsyncpa [#allocation4], 1 }
 0x302   :  { %422 = vsyncpa [#allocation4 + $0x1], 1 }

</bundles_post_ra>
